<compile_context>
chip_gen: v7x
topology: tpu7x:2x2x1
jax: 0.10.0
libtpu: 0.0.40
codegen_flags: <defaults>
</compile_context>

<pallas_src>
import functools

import numpy as np
import jax
import jax.numpy as jnp
from jax import lax
from jax.experimental import pallas as pl
from jax.experimental.pallas import tpu as pltpu


def _asf_kernel(W, patches_ref, w9_ref, wcw1_ref, wcw2_ref, wattn_ref,
                sp_taps_ref, wsp2_ref, feat_ref, out_ref, xs_ref):
    """Fused forward pass for one batch tile (grid=(N // batch_tile,))."""
    B, _, HW = patches_ref.shape
    outC = wattn_ref.shape[0]
    PAD = W + 1

    # Flat zero-padded row used by the spatialWise 3x3: zero once per grid step
    # (the borders stay zero; only the interior is rewritten per batch element).
    xs_ref[...] = jnp.zeros(xs_ref.shape, xs_ref.dtype)

    w9 = w9_ref[...]
    wcw1 = wcw1_ref[...]
    wcw2 = wcw2_ref[...]
    wattn = wattn_ref[...]
    sp_taps = sp_taps_ref[...]
    wsp2 = wsp2_ref[0]

    for b in range(B):
        # --- conv: 3x3, inChannel -> expChannel, no bias: one fused MXU matmul ---
        conv = jnp.dot(w9, patches_ref[b],
                       preferred_element_type=jnp.float32)                # (Cexp, HW)

        # --- channelWise: global avg pool -> 1x1 -> ReLU -> 1x1 -> sigmoid ---
        pooled = jnp.mean(conv, axis=1, keepdims=True)                    # (Cexp, 1)
        h1 = jnp.maximum(
            jnp.dot(wcw1, pooled, preferred_element_type=jnp.float32), 0.0)
        cw = jax.nn.sigmoid(jnp.dot(wcw2, h1, preferred_element_type=jnp.float32))
        gx = conv + cw                                                    # broadcast over HW

        # --- spatialWise on the channel-mean map: 3x3 -> ReLU -> 1x1 -> sigmoid ---
        xm = jnp.mean(gx, axis=0, keepdims=True)                          # (1, HW)
        xs_ref[:, PAD:PAD + HW] = xm
        sp = jnp.zeros((1, HW), jnp.float32)
        t = 0
        for dy in (-1, 0, 1):
            for dx in (-1, 0, 1):
                start = PAD + dy * W + dx                                 # static offset
                sp = sp + sp_taps[t:t + 1, :] * xs_ref[:, start:start + HW]
                t += 1
        sp = jax.nn.sigmoid(jnp.maximum(sp, 0.0) * wsp2)
        gx = gx + sp                                                      # broadcast over channels

        # --- attnWise: 1x1 conv -> sigmoid ---
        score = jax.nn.sigmoid(
            jnp.dot(wattn, gx, preferred_element_type=jnp.float32)
        ).astype(out_ref.dtype)                                           # (outC, HW)

        # --- per-scale gating of the pyramid features (lane-dense (Cf, HW) ops) ---
        for i in range(outC):
            out_ref[b, i] = score[i:i + 1, :] * feat_ref[b, i]


def _pick_batch_tile(N):
    # Largest divisor of N (<= 8) that still leaves >= 2 grid steps, so a second
    # TensorCore (v7x) gets work; otherwise the largest divisor itself.
    divisors = [b for b in (8, 4, 2, 1) if N % b == 0]
    for b in divisors:
        if N // b >= 2:
            return b
    return divisors[0]


def adaptive_scale_fusion(inp_nchw, features_nchw, params, *, batch_tile=None):
    """inp_nchw: (N, Cin, H, W); features_nchw: list of outC arrays (N, Cf, H, W)."""
    w_conv, w_cw1, w_cw2, w_sp1, w_sp2, w_attn = params
    N, Cin, H, W = inp_nchw.shape
    Cexp = w_conv.shape[0]
    Cred = w_cw1.shape[0]
    outC = w_attn.shape[0]
    Cf = features_nchw[0].shape[1]
    HW = H * W

    if batch_tile is None or N % batch_tile != 0:
        batch_tile = _pick_batch_tile(N)
    grid = (N // batch_tile,)

    # --- glue (plain JAX / numpy; reshapes of the big feature tensors are free) ---
    # im2col of the small input: (N, 9*Cin, H*W), tap-major then channel.
    x = inp_nchw.astype(jnp.float32)
    x_pad = jnp.pad(x, ((0, 0), (0, 0), (1, 1), (1, 1)))
    patches = jnp.concatenate(
        [x_pad[:, :, ky:ky + H, kx:kx + W].reshape(N, Cin, HW)
         for ky in range(3) for kx in range(3)], axis=1)

    w9 = jnp.transpose(w_conv, (0, 2, 3, 1)).reshape(Cexp, 9 * Cin).astype(jnp.float32)
    wcw1 = w_cw1.reshape(Cred, Cexp).astype(jnp.float32)
    wcw2 = w_cw2.reshape(Cexp, Cred).astype(jnp.float32)
    wattn = w_attn.reshape(outC, Cexp).astype(jnp.float32)

    # spatialWise 3x3: per-tap rows of (weight * 2-D validity mask), shape (9, H*W).
    rows = np.arange(HW) // W
    cols = np.arange(HW) % W
    masks = np.stack(
        [((rows + dy >= 0) & (rows + dy < H) & (cols + dx >= 0) & (cols + dx < W))
         for dy in (-1, 0, 1) for dx in (-1, 0, 1)], axis=0).astype(np.float32)
    sp_taps = w_sp1.reshape(9, 1).astype(jnp.float32) * jnp.asarray(masks)
    wsp2 = w_sp2.reshape(1).astype(jnp.float32)

    # Pyramid features in native dtype, channels-major, lane-dense H*W last.
    feat = jnp.stack([f.reshape(N, Cf, HW) for f in features_nchw], axis=1)  # (N, outC, Cf, HW)

    kernel = functools.partial(_asf_kernel, W)

    out = pl.pallas_call(
        kernel,
        out_shape=jax.ShapeDtypeStruct((N, outC, Cf, HW), feat.dtype),
        grid=grid,
        in_specs=[
            pl.BlockSpec((batch_tile, 9 * Cin, HW), lambda n: (n, 0, 0)),      # im2col input
            pl.BlockSpec((Cexp, 9 * Cin), lambda n: (0, 0)),                   # fused 3x3 weights
            pl.BlockSpec((Cred, Cexp), lambda n: (0, 0)),                      # channelWise fc1
            pl.BlockSpec((Cexp, Cred), lambda n: (0, 0)),                      # channelWise fc2
            pl.BlockSpec((outC, Cexp), lambda n: (0, 0)),                      # attnWise 1x1
            pl.BlockSpec((9, HW), lambda n: (0, 0)),                           # spatial taps*masks
            pl.BlockSpec(memory_space=pltpu.MemorySpace.SMEM),                 # spatial 1x1 scalar
            pl.BlockSpec((batch_tile, outC, Cf, HW), lambda n: (n, 0, 0, 0)),  # features
        ],
        out_specs=pl.BlockSpec((batch_tile, outC, Cf, HW), lambda n: (n, 0, 0, 0)),
        scratch_shapes=[pltpu.VMEM((1, HW + 2 * (W + 1)), jnp.float32)],       # flat padded row
        compiler_params=pltpu.CompilerParams(
            dimension_semantics=("parallel",),
            vmem_limit_bytes=64 * 1024 * 1024),
    )(patches, w9, wcw1, wcw2, wattn, sp_taps, wsp2, feat)

    # (N, outC, Cf, H*W) -> NCHW concat along channel: (N, outC*Cf, H, W) (free reshape).
    return out.reshape(N, outC * Cf, H, W)


# ---------------- pure-JAX reference (for correctness check) ----------------
def _conv(x, w, padding):
    return lax.conv_general_dilated(x, w, (1, 1), padding,
                                    dimension_numbers=('NCHW', 'OIHW', 'NCHW'))


def reference(inp, features, params):
    w_conv, w_cw1, w_cw2, w_sp1, w_sp2, w_attn = params
    out = _conv(inp, w_conv, 'SAME')
    pooled = jnp.mean(out, axis=(2, 3), keepdims=True)
    h1 = jax.nn.relu(_conv(pooled, w_cw1, 'VALID'))
    cw = jax.nn.sigmoid(_conv(h1, w_cw2, 'VALID'))
    gx = cw + out
    xm = jnp.mean(gx, axis=1, keepdims=True)
    sp = jax.nn.relu(_conv(xm, w_sp1, 'SAME'))
    sp = jax.nn.sigmoid(_conv(sp, w_sp2, 'VALID'))
    gx = gx + sp
    score = jax.nn.sigmoid(_conv(gx, w_attn, 'VALID'))
    outC = w_attn.shape[0]
    return jnp.concatenate([score[:, i:i + 1] * features[i] for i in range(outC)], axis=1)


def kaiming_normal(key, shape):
    # nn.init.kaiming_normal_(mode='fan_out', nonlinearity='relu') for OIHW conv weights
    fan_out = shape[0] * shape[2] * shape[3]
    std = (2.0 / fan_out) ** 0.5
    return std * jax.random.normal(key, shape, dtype=jnp.float32)


if __name__ == "__main__":
    key = jax.random.PRNGKey(0)
    N, Cin, H, W = 2, 4, 16, 16
    Cexp, outC, Cf = 8, 4, 4
    Cred = Cexp // 4

    ks = jax.random.split(key, 12)
    w_conv = kaiming_normal(ks[0], (Cexp, Cin, 3, 3))
    w_cw1 = kaiming_normal(ks[1], (Cred, Cexp, 1, 1))
    w_cw2 = kaiming_normal(ks[2], (Cexp, Cred, 1, 1))
    w_sp1 = kaiming_normal(ks[3], (1, 1, 3, 3))
    w_sp2 = kaiming_normal(ks[4], (1, 1, 1, 1))
    w_attn = kaiming_normal(ks[5], (outC, Cexp, 1, 1))
    params = (w_conv, w_cw1, w_cw2, w_sp1, w_sp2, w_attn)

    x = jax.random.normal(ks[6], (N, Cin, H, W), dtype=jnp.float32)
    features = [jax.random.normal(ks[7 + i], (N, Cf, H, W), dtype=jnp.float32)
                for i in range(outC)]

    out = adaptive_scale_fusion(x, features, params)
    out = jax.block_until_ready(out)

    ref = reference(x, features, params)
    assert out.shape == (N, outC * Cf, H, W)
    np.testing.assert_allclose(np.asarray(out), np.asarray(ref), atol=2e-3, rtol=2e-3)
    print("KERNEL_OK")
</pallas_src>

<mosaic_0001>
module attributes {stable_mosaic.version = 11 : i64} {
  func.func @_asf_kernel(%arg0: i32, %arg1: memref<1x36x256xf32, #tpu.memory_space<vmem>>, %arg2: memref<8x36xf32, #tpu.memory_space<vmem>>, %arg3: memref<2x8xf32, #tpu.memory_space<vmem>>, %arg4: memref<8x2xf32, #tpu.memory_space<vmem>>, %arg5: memref<4x8xf32, #tpu.memory_space<vmem>>, %arg6: memref<9x256xf32, #tpu.memory_space<vmem>>, %arg7: memref<1xf32, #tpu.memory_space<smem>>, %arg8: memref<1x4x4x256xf32, #tpu.memory_space<vmem>>, %arg9: memref<1x4x4x256xf32, #tpu.memory_space<vmem>>, %arg10: memref<1x290xf32, #tpu.memory_space<vmem>>) attributes {dimension_semantics = [#tpu.dimension_semantics<parallel>], iteration_bounds = array<i64: 2>, scalar_prefetch = 0 : i64, scratch_operands = 1 : i64, tpu.core_type = #tpu.core_type<tc>, window_params = [{transform_indices = @transform_0, window_bounds = array<i64: 1, 36, 256>}, {pipeline_mode = #tpu.pipeline_mode<synchronous>, transform_indices = @transform_1, window_bounds = array<i64: 8, 36>}, {pipeline_mode = #tpu.pipeline_mode<synchronous>, transform_indices = @transform_2, window_bounds = array<i64: 2, 8>}, {pipeline_mode = #tpu.pipeline_mode<synchronous>, transform_indices = @transform_3, window_bounds = array<i64: 8, 2>}, {pipeline_mode = #tpu.pipeline_mode<synchronous>, transform_indices = @transform_4, window_bounds = array<i64: 4, 8>}, {pipeline_mode = #tpu.pipeline_mode<synchronous>, transform_indices = @transform_5, window_bounds = array<i64: 9, 256>}, {transform_indices = @transform_6, window_bounds = array<i64: 1>}, {transform_indices = @transform_7, window_bounds = array<i64: 1, 4, 4, 256>}, {transform_indices = @transform_8, window_bounds = array<i64: 1, 4, 4, 256>}]} {
    %cst = arith.constant 0.000000e+00 : f32
    %0 = vector.broadcast %cst : f32 to vector<1x290xf32>
    %c0 = arith.constant 0 : index
    %c0_0 = arith.constant 0 : index
    %1 = vector.load %arg10[%c0, %c0_0] : memref<1x290xf32, #tpu.memory_space<vmem>>, vector<1x290xf32>
    tpu.vector_store %arg10[%c0, %c0_0], %0 {strides = array<i32>} : memref<1x290xf32, #tpu.memory_space<vmem>>, vector<1x290xf32>,
    %c0_1 = arith.constant 0 : index
    %c0_2 = arith.constant 0 : index
    %2 = vector.load %arg2[%c0_1, %c0_2] : memref<8x36xf32, #tpu.memory_space<vmem>>, vector<8x36xf32>
    %c0_3 = arith.constant 0 : index
    %c0_4 = arith.constant 0 : index
    %3 = vector.load %arg3[%c0_3, %c0_4] : memref<2x8xf32, #tpu.memory_space<vmem>>, vector<2x8xf32>
    %c0_5 = arith.constant 0 : index
    %c0_6 = arith.constant 0 : index
    %4 = vector.load %arg4[%c0_5, %c0_6] : memref<8x2xf32, #tpu.memory_space<vmem>>, vector<8x2xf32>
    %c0_7 = arith.constant 0 : index
    %c0_8 = arith.constant 0 : index
    %5 = vector.load %arg5[%c0_7, %c0_8] : memref<4x8xf32, #tpu.memory_space<vmem>>, vector<4x8xf32>
    %c0_9 = arith.constant 0 : index
    %c0_10 = arith.constant 0 : index
    %6 = vector.load %arg6[%c0_9, %c0_10] : memref<9x256xf32, #tpu.memory_space<vmem>>, vector<9x256xf32>
    %c0_11 = arith.constant 0 : index
    %7 = memref.load %arg7[%c0_11] : memref<1xf32, #tpu.memory_space<smem>>
    %c0_12 = arith.constant 0 : index
    %c0_13 = arith.constant 0 : index
    %c0_14 = arith.constant 0 : index
    %8 = vector.load %arg1[%c0_12, %c0_13, %c0_14] : memref<1x36x256xf32, #tpu.memory_space<vmem>>, vector<1x36x256xf32>
    %9 = vector.shape_cast %8 : vector<1x36x256xf32> to vector<36x256xf32>
    %cst_15 = arith.constant dense<0.000000e+00> : vector<8x256xf32>
    %10 = tpu.matmul %2, %9, %cst_15 {dimension_numbers = #tpu.dot_dimension_numbers<[1], [0], [0], [1], [0, 0, 1, 1], [], []>} : vector<8x36xf32>, vector<36x256xf32>, vector<8x256xf32> -> vector<8x256xf32>
    %cst_16 = arith.constant dense<0.000000e+00> : vector<8xf32>
    %11 = vector.multi_reduction <add>, %10, %cst_16 [1] : vector<8x256xf32> to vector<8xf32>
    %12 = vector.shape_cast %11 : vector<8xf32> to vector<8x1xf32>
    %cst_17 = arith.constant 2.560000e+02 : f32
    %13 = vector.broadcast %cst_17 : f32 to vector<8x1xf32>
    %14 = arith.divf %12, %13 : vector<8x1xf32>
    %cst_18 = arith.constant dense<0.000000e+00> : vector<2x1xf32>
    %15 = tpu.matmul %3, %14, %cst_18 {dimension_numbers = #tpu.dot_dimension_numbers<[1], [0], [0], [1], [0, 0, 1, 1], [], []>} : vector<2x8xf32>, vector<8x1xf32>, vector<2x1xf32> -> vector<2x1xf32>
    %cst_19 = arith.constant 0.000000e+00 : f32
    %16 = vector.broadcast %cst_19 : f32 to vector<2x1xf32>
    %17 = arith.maximumf %15, %16 : vector<2x1xf32>
    %cst_20 = arith.constant dense<0.000000e+00> : vector<8x1xf32>
    %18 = tpu.matmul %4, %17, %cst_20 {dimension_numbers = #tpu.dot_dimension_numbers<[1], [0], [0], [1], [0, 0, 1, 1], [], []>} : vector<8x2xf32>, vector<2x1xf32>, vector<8x1xf32> -> vector<8x1xf32>
    %19 = arith.negf %18 : vector<8x1xf32>
    %20 = math.exp %19 : vector<8x1xf32>
    %cst_21 = arith.constant 1.000000e+00 : f32
    %21 = vector.broadcast %cst_21 : f32 to vector<8x1xf32>
    %22 = arith.addf %21, %20 : vector<8x1xf32>
    %23 = arith.divf %21, %22 : vector<8x1xf32>
    %24 = vector.broadcast %23 : vector<8x1xf32> to vector<8x256xf32>
    %25 = arith.addf %10, %24 : vector<8x256xf32>
    %cst_22 = arith.constant dense<0.000000e+00> : vector<256xf32>
    %26 = vector.multi_reduction <add>, %25, %cst_22 [0] : vector<8x256xf32> to vector<256xf32>
    %27 = vector.shape_cast %26 : vector<256xf32> to vector<1x256xf32>
    %cst_23 = arith.constant 8.000000e+00 : f32
    %28 = vector.broadcast %cst_23 : f32 to vector<1x256xf32>
    %29 = arith.divf %27, %28 : vector<1x256xf32>
    %c0_24 = arith.constant 0 : index
    %c17 = arith.constant 17 : index
    %30 = vector.load %arg10[%c0_24, %c17] : memref<1x290xf32, #tpu.memory_space<vmem>>, vector<1x256xf32>
    tpu.vector_store %arg10[%c0_24, %c17], %29 {strides = array<i32>} : memref<1x290xf32, #tpu.memory_space<vmem>>, vector<1x256xf32>,
    %cst_25 = arith.constant 0.000000e+00 : f32
    %31 = vector.broadcast %cst_25 : f32 to vector<1x256xf32>
    %32 = vector.extract_strided_slice %6 {offsets = [0, 0], sizes = [1, 256], strides = [1, 1]} : vector<9x256xf32> to vector<1x256xf32>
    %c0_26 = arith.constant 0 : index
    %c0_27 = arith.constant 0 : index
    %33 = vector.load %arg10[%c0_26, %c0_27] : memref<1x290xf32, #tpu.memory_space<vmem>>, vector<1x256xf32>
    %34 = arith.mulf %32, %33 : vector<1x256xf32>
    %35 = arith.addf %31, %34 : vector<1x256xf32>
    %36 = vector.extract_strided_slice %6 {offsets = [1, 0], sizes = [1, 256], strides = [1, 1]} : vector<9x256xf32> to vector<1x256xf32>
    %c0_28 = arith.constant 0 : index
    %c1 = arith.constant 1 : index
    %37 = vector.load %arg10[%c0_28, %c1] : memref<1x290xf32, #tpu.memory_space<vmem>>, vector<1x256xf32>
    %38 = arith.mulf %36, %37 : vector<1x256xf32>
    %39 = arith.addf %35, %38 : vector<1x256xf32>
    %40 = vector.extract_strided_slice %6 {offsets = [2, 0], sizes = [1, 256], strides = [1, 1]} : vector<9x256xf32> to vector<1x256xf32>
    %c0_29 = arith.constant 0 : index
    %c2 = arith.constant 2 : index
    %41 = vector.load %arg10[%c0_29, %c2] : memref<1x290xf32, #tpu.memory_space<vmem>>, vector<1x256xf32>
    %42 = arith.mulf %40, %41 : vector<1x256xf32>
    %43 = arith.addf %39, %42 : vector<1x256xf32>
    %44 = vector.extract_strided_slice %6 {offsets = [3, 0], sizes = [1, 256], strides = [1, 1]} : vector<9x256xf32> to vector<1x256xf32>
    %c0_30 = arith.constant 0 : index
    %c16 = arith.constant 16 : index
    %45 = vector.load %arg10[%c0_30, %c16] : memref<1x290xf32, #tpu.memory_space<vmem>>, vector<1x256xf32>
    %46 = arith.mulf %44, %45 : vector<1x256xf32>
    %47 = arith.addf %43, %46 : vector<1x256xf32>
    %48 = vector.extract_strided_slice %6 {offsets = [4, 0], sizes = [1, 256], strides = [1, 1]} : vector<9x256xf32> to vector<1x256xf32>
    %c0_31 = arith.constant 0 : index
    %c17_32 = arith.constant 17 : index
    %49 = vector.load %arg10[%c0_31, %c17_32] : memref<1x290xf32, #tpu.memory_space<vmem>>, vector<1x256xf32>
    %50 = arith.mulf %48, %49 : vector<1x256xf32>
    %51 = arith.addf %47, %50 : vector<1x256xf32>
    %52 = vector.extract_strided_slice %6 {offsets = [5, 0], sizes = [1, 256], strides = [1, 1]} : vector<9x256xf32> to vector<1x256xf32>
    %c0_33 = arith.constant 0 : index
    %c18 = arith.constant 18 : index
    %53 = vector.load %arg10[%c0_33, %c18] : memref<1x290xf32, #tpu.memory_space<vmem>>, vector<1x256xf32>
    %54 = arith.mulf %52, %53 : vector<1x256xf32>
    %55 = arith.addf %51, %54 : vector<1x256xf32>
    %56 = vector.extract_strided_slice %6 {offsets = [6, 0], sizes = [1, 256], strides = [1, 1]} : vector<9x256xf32> to vector<1x256xf32>
    %c0_34 = arith.constant 0 : index
    %c32 = arith.constant 32 : index
    %57 = vector.load %arg10[%c0_34, %c32] : memref<1x290xf32, #tpu.memory_space<vmem>>, vector<1x256xf32>
    %58 = arith.mulf %56, %57 : vector<1x256xf32>
    %59 = arith.addf %55, %58 : vector<1x256xf32>
    %60 = vector.extract_strided_slice %6 {offsets = [7, 0], sizes = [1, 256], strides = [1, 1]} : vector<9x256xf32> to vector<1x256xf32>
    %c0_35 = arith.constant 0 : index
    %c33 = arith.constant 33 : index
    %61 = vector.load %arg10[%c0_35, %c33] : memref<1x290xf32, #tpu.memory_space<vmem>>, vector<1x256xf32>
    %62 = arith.mulf %60, %61 : vector<1x256xf32>
    %63 = arith.addf %59, %62 : vector<1x256xf32>
    %64 = vector.extract_strided_slice %6 {offsets = [8, 0], sizes = [1, 256], strides = [1, 1]} : vector<9x256xf32> to vector<1x256xf32>
    %c0_36 = arith.constant 0 : index
    %c34 = arith.constant 34 : index
    %65 = vector.load %arg10[%c0_36, %c34] : memref<1x290xf32, #tpu.memory_space<vmem>>, vector<1x256xf32>
    %66 = arith.mulf %64, %65 : vector<1x256xf32>
    %67 = arith.addf %63, %66 : vector<1x256xf32>
    %cst_37 = arith.constant 0.000000e+00 : f32
    %68 = vector.broadcast %cst_37 : f32 to vector<1x256xf32>
    %69 = arith.maximumf %67, %68 : vector<1x256xf32>
    %70 = vector.broadcast %7 : f32 to vector<1x256xf32>
    %71 = arith.mulf %69, %70 : vector<1x256xf32>
    %72 = arith.negf %71 : vector<1x256xf32>
    %73 = math.exp %72 : vector<1x256xf32>
    %cst_38 = arith.constant 1.000000e+00 : f32
    %74 = vector.broadcast %cst_38 : f32 to vector<1x256xf32>
    %75 = arith.addf %74, %73 : vector<1x256xf32>
    %76 = arith.divf %74, %75 : vector<1x256xf32>
    %77 = vector.broadcast %76 : vector<1x256xf32> to vector<8x256xf32>
    %78 = arith.addf %25, %77 : vector<8x256xf32>
    %cst_39 = arith.constant dense<0.000000e+00> : vector<4x256xf32>
    %79 = tpu.matmul %5, %78, %cst_39 {dimension_numbers = #tpu.dot_dimension_numbers<[1], [0], [0], [1], [0, 0, 1, 1], [], []>} : vector<4x8xf32>, vector<8x256xf32>, vector<4x256xf32> -> vector<4x256xf32>
    %80 = arith.negf %79 : vector<4x256xf32>
    %81 = math.exp %80 : vector<4x256xf32>
    %cst_40 = arith.constant 1.000000e+00 : f32
    %82 = vector.broadcast %cst_40 : f32 to vector<4x256xf32>
    %83 = arith.addf %82, %81 : vector<4x256xf32>
    %84 = arith.divf %82, %83 : vector<4x256xf32>
    %85 = vector.extract_strided_slice %84 {offsets = [0, 0], sizes = [1, 256], strides = [1, 1]} : vector<4x256xf32> to vector<1x256xf32>
    %c0_41 = arith.constant 0 : index
    %c0_42 = arith.constant 0 : index
    %c0_43 = arith.constant 0 : index
    %c0_44 = arith.constant 0 : index
    %86 = vector.load %arg8[%c0_41, %c0_42, %c0_43, %c0_44] : memref<1x4x4x256xf32, #tpu.memory_space<vmem>>, vector<1x1x4x256xf32>
    %87 = vector.shape_cast %86 : vector<1x1x4x256xf32> to vector<4x256xf32>
    %88 = vector.broadcast %85 : vector<1x256xf32> to vector<4x256xf32>
    %89 = arith.mulf %88, %87 : vector<4x256xf32>
    %c0_45 = arith.constant 0 : index
    %c0_46 = arith.constant 0 : index
    %c0_47 = arith.constant 0 : index
    %c0_48 = arith.constant 0 : index
    %90 = vector.load %arg9[%c0_45, %c0_46, %c0_47, %c0_48] : memref<1x4x4x256xf32, #tpu.memory_space<vmem>>, vector<1x1x4x256xf32>
    %91 = vector.shape_cast %90 : vector<1x1x4x256xf32> to vector<4x256xf32>
    %92 = vector.shape_cast %89 : vector<4x256xf32> to vector<1x1x4x256xf32>
    tpu.vector_store %arg9[%c0_45, %c0_46, %c0_47, %c0_48], %92 {strides = array<i32>} : memref<1x4x4x256xf32, #tpu.memory_space<vmem>>, vector<1x1x4x256xf32>,
    %93 = vector.extract_strided_slice %84 {offsets = [1, 0], sizes = [1, 256], strides = [1, 1]} : vector<4x256xf32> to vector<1x256xf32>
    %c0_49 = arith.constant 0 : index
    %c1_50 = arith.constant 1 : index
    %c0_51 = arith.constant 0 : index
    %c0_52 = arith.constant 0 : index
    %94 = vector.load %arg8[%c0_49, %c1_50, %c0_51, %c0_52] : memref<1x4x4x256xf32, #tpu.memory_space<vmem>>, vector<1x1x4x256xf32>
    %95 = vector.shape_cast %94 : vector<1x1x4x256xf32> to vector<4x256xf32>
    %96 = vector.broadcast %93 : vector<1x256xf32> to vector<4x256xf32>
    %97 = arith.mulf %96, %95 : vector<4x256xf32>
    %c0_53 = arith.constant 0 : index
    %c1_54 = arith.constant 1 : index
    %c0_55 = arith.constant 0 : index
    %c0_56 = arith.constant 0 : index
    %98 = vector.load %arg9[%c0_53, %c1_54, %c0_55, %c0_56] : memref<1x4x4x256xf32, #tpu.memory_space<vmem>>, vector<1x1x4x256xf32>
    %99 = vector.shape_cast %98 : vector<1x1x4x256xf32> to vector<4x256xf32>
    %100 = vector.shape_cast %97 : vector<4x256xf32> to vector<1x1x4x256xf32>
    tpu.vector_store %arg9[%c0_53, %c1_54, %c0_55, %c0_56], %100 {strides = array<i32>} : memref<1x4x4x256xf32, #tpu.memory_space<vmem>>, vector<1x1x4x256xf32>,
    %101 = vector.extract_strided_slice %84 {offsets = [2, 0], sizes = [1, 256], strides = [1, 1]} : vector<4x256xf32> to vector<1x256xf32>
    %c0_57 = arith.constant 0 : index
    %c2_58 = arith.constant 2 : index
    %c0_59 = arith.constant 0 : index
    %c0_60 = arith.constant 0 : index
    %102 = vector.load %arg8[%c0_57, %c2_58, %c0_59, %c0_60] : memref<1x4x4x256xf32, #tpu.memory_space<vmem>>, vector<1x1x4x256xf32>
    %103 = vector.shape_cast %102 : vector<1x1x4x256xf32> to vector<4x256xf32>
    %104 = vector.broadcast %101 : vector<1x256xf32> to vector<4x256xf32>
    %105 = arith.mulf %104, %103 : vector<4x256xf32>
    %c0_61 = arith.constant 0 : index
    %c2_62 = arith.constant 2 : index
    %c0_63 = arith.constant 0 : index
    %c0_64 = arith.constant 0 : index
    %106 = vector.load %arg9[%c0_61, %c2_62, %c0_63, %c0_64] : memref<1x4x4x256xf32, #tpu.memory_space<vmem>>, vector<1x1x4x256xf32>
    %107 = vector.shape_cast %106 : vector<1x1x4x256xf32> to vector<4x256xf32>
    %108 = vector.shape_cast %105 : vector<4x256xf32> to vector<1x1x4x256xf32>
    tpu.vector_store %arg9[%c0_61, %c2_62, %c0_63, %c0_64], %108 {strides = array<i32>} : memref<1x4x4x256xf32, #tpu.memory_space<vmem>>, vector<1x1x4x256xf32>,
    %109 = vector.extract_strided_slice %84 {offsets = [3, 0], sizes = [1, 256], strides = [1, 1]} : vector<4x256xf32> to vector<1x256xf32>
    %c0_65 = arith.constant 0 : index
    %c3 = arith.constant 3 : index
    %c0_66 = arith.constant 0 : index
    %c0_67 = arith.constant 0 : index
    %110 = vector.load %arg8[%c0_65, %c3, %c0_66, %c0_67] : memref<1x4x4x256xf32, #tpu.memory_space<vmem>>, vector<1x1x4x256xf32>
    %111 = vector.shape_cast %110 : vector<1x1x4x256xf32> to vector<4x256xf32>
    %112 = vector.broadcast %109 : vector<1x256xf32> to vector<4x256xf32>
    %113 = arith.mulf %112, %111 : vector<4x256xf32>
    %c0_68 = arith.constant 0 : index
    %c3_69 = arith.constant 3 : index
    %c0_70 = arith.constant 0 : index
    %c0_71 = arith.constant 0 : index
    %114 = vector.load %arg9[%c0_68, %c3_69, %c0_70, %c0_71] : memref<1x4x4x256xf32, #tpu.memory_space<vmem>>, vector<1x1x4x256xf32>
    %115 = vector.shape_cast %114 : vector<1x1x4x256xf32> to vector<4x256xf32>
    %116 = vector.shape_cast %113 : vector<4x256xf32> to vector<1x1x4x256xf32>
    tpu.vector_store %arg9[%c0_68, %c3_69, %c0_70, %c0_71], %116 {strides = array<i32>} : memref<1x4x4x256xf32, #tpu.memory_space<vmem>>, vector<1x1x4x256xf32>,
    return
  }
  func.func @transform_0(%arg0: i32) -> (i32, i32, i32) {
    %c0_i32 = arith.constant 0 : i32
    %c0_i32_0 = arith.constant 0 : i32
    %c0_i32_1 = arith.constant 0 : i32
    return %arg0, %c0_i32, %c0_i32_0 : i32, i32, i32
  }
  func.func @transform_1(%arg0: i32) -> (i32, i32) {
    %c0_i32 = arith.constant 0 : i32
    %c0_i32_0 = arith.constant 0 : i32
    %c0_i32_1 = arith.constant 0 : i32
    return %c0_i32, %c0_i32_0 : i32, i32
  }
  func.func @transform_2(%arg0: i32) -> (i32, i32) {
    %c0_i32 = arith.constant 0 : i32
    %c0_i32_0 = arith.constant 0 : i32
    %c0_i32_1 = arith.constant 0 : i32
    return %c0_i32, %c0_i32_0 : i32, i32
  }
  func.func @transform_3(%arg0: i32) -> (i32, i32) {
    %c0_i32 = arith.constant 0 : i32
    %c0_i32_0 = arith.constant 0 : i32
    %c0_i32_1 = arith.constant 0 : i32
    return %c0_i32, %c0_i32_0 : i32, i32
  }
  func.func @transform_4(%arg0: i32) -> (i32, i32) {
    %c0_i32 = arith.constant 0 : i32
    %c0_i32_0 = arith.constant 0 : i32
    %c0_i32_1 = arith.constant 0 : i32
    return %c0_i32, %c0_i32_0 : i32, i32
  }
  func.func @transform_5(%arg0: i32) -> (i32, i32) {
    %c0_i32 = arith.constant 0 : i32
    %c0_i32_0 = arith.constant 0 : i32
    %c0_i32_1 = arith.constant 0 : i32
    return %c0_i32, %c0_i32_0 : i32, i32
  }
  func.func @transform_6(%arg0: i32) -> i32 {
    %c0_i32 = arith.constant 0 : i32
    %c0_i32_0 = arith.constant 0 : i32
    return %c0_i32 : i32
  }
  func.func @transform_7(%arg0: i32) -> (i32, i32, i32, i32) {
    %c0_i32 = arith.constant 0 : i32
    %c0_i32_0 = arith.constant 0 : i32
    %c0_i32_1 = arith.constant 0 : i32
    %c0_i32_2 = arith.constant 0 : i32
    return %arg0, %c0_i32, %c0_i32_0, %c0_i32_1 : i32, i32, i32, i32
  }
  func.func @transform_8(%arg0: i32) -> (i32, i32, i32, i32) {
    %c0_i32 = arith.constant 0 : i32
    %c0_i32_0 = arith.constant 0 : i32
    %c0_i32_1 = arith.constant 0 : i32
    %c0_i32_2 = arith.constant 0 : i32
    return %arg0, %c0_i32, %c0_i32_0, %c0_i32_1 : i32, i32, i32, i32
  }
}

</mosaic_0001>

<bundles_post_ra>
// kernel: tpu_custom_call.1
= control target key start
LH: loop header
LB: loop body
LE: loop exit
PB: predicated region body
PF: predicated region fallthrough
CT: control target
= control target key end

     0   :  { %s2289_s0 = inlined_call_operand.hbm [shape: f32[2,36,256], index: 0, kind: input, shape index: {}]   ;;  %s2290_s1 = inlined_call_operand.hbm [shape: f32[8,36], index: 1, kind: input, shape index: {}]   ;;  %s2291_s2 = inlined_call_operand.hbm [shape: f32[2,8], index: 2, kind: input, shape index: {}]   ;;  %s2292_s3 = inlined_call_operand.hbm [shape: f32[8,2], index: 3, kind: input, shape index: {}]   ;;  %s2293_s4 = inlined_call_operand.hbm [shape: f32[4,8], index: 4, kind: input, shape index: {}]   ;;  %s2294_s5 = inlined_call_operand.hbm [shape: f32[9,256], index: 5, kind: input, shape index: {}]   ;;  %s2295_s6 = inlined_call_operand.<no memory space> [shape: f32[1], index: 6, kind: input, shape index: {}]   ;;  %s2296_s7 = inlined_call_operand.hbm [shape: f32[2,4,4,256], index: 7, kind: input, shape index: {}]   ;;  %s2297_s8 = inlined_call_operand.hbm [shape: f32[2,4,4,256], index: 8, kind: output, shape index: {}]  }
   0x1   :  { %2313 = sst [smem:[#allocation27_spill]] %s2289_s0 }
   0x2   :  { %2314 = sst [smem:[#allocation28_spill]] %s2290_s1 }
   0x3   :  { %2315 = sst [smem:[#allocation29_spill]] %s2292_s3 }
   0x4   :  { %13 = sst [smem:[#allocation3]] %s2295_s6 }
   0x5   :  { %14 = vsyncpa [#allocation5], 0 }
   0x6   :  { %16 = vsyncpa [#allocation5 + $0x1], 0 }
   0x7   :  { %17 = vsyncpa [#allocation8], 0 }
   0x8   :  { %18 = vsyncpa [#allocation11], 0 }
   0x9   :  { %19 = vsyncpa [#allocation14], 0 }
   0xa   :  { %20 = vsyncpa [#allocation6], 0 }
   0xb   :  { %22 = vsyncpa [#allocation6 + $0x1], 0  ;;  %s1863_s29 = smov 0   ;;  %s1865_s30 = smov 0  }
   0xc   :  { %s1867_s9 = smov 0   ;;  %s1869_s10 = smov 0  }
   0xd LB: > { %2316 = sst [smem:[#allocation23_spill]] %s1782_s9  ;;  %s1788_s6 = smov [#allocation7]   ;;  %s1786_s10 = sphi %s1869_s10, %s2349_s10   ;;  %s1782_s9 = sphi %s1867_s9, %s2351_s9   ;;  %s1778_s30 = sphi %s1865_s30, %s2353_s30   ;;  %s1774_s29 = sphi %s1863_s29, %s2352_s29  }
   0xe   : > { %s250_s11 = sshll.u32 %s1788_s6, 4  ;;  %s1884_s12 = sadd.s32 4294967295, %s1786_s10   ;;  %s251_s11 = int_to_ptr.vmem [resolvable:$true] %s250_s11 }
   0xf   : > { %p1289_p0 = scmp.ge.s32.totalorder %s1786_s10, 1  ;;  %p2298_p1 = scmp.eq.s32.totalorder %s1884_s12, 0 }
  0x10   : > { %p237_p2 = scmp.lt.s32.totalorder %s1786_s10, 3  ;;  %s1789_s14 = smov [#allocation10]  }
  0x11   : > { %s272_s15 = sshll.u32 %s1789_s14, 4  ;;  %s2319_s1 = sld [smem:[#allocation28_spill]]  ;;  %s1896_s15 = int_to_ptr.vmem [resolvable:$true] %s272_s15 }
  0x12   : > { %p1889_p3 = pnand %p1289_p0, %p237_p2 }
  0x14   : > { %s2317_s13 = scalar_select %p1889_p3, 1, 0 }
  0x15   : > { %p1384_p5 = pneg %p1889_p3 }
  0x17   : > { %p1900_p6 = pnand %p1384_p5, %p2298_p1  ;;  %s1504_s19 = scalar_lea.hbm %s2319_s1, 128 }
  0x18   : > { %p1505_p7 = scmp.ne.s32.totalorder %s2319_s1, %s1504_s19  ;;  %p1511_p11 = scmp.lt.u32.totalorder %s1504_s19, %s2319_s1 }
  0x19   : > { %s2318_s16 = scalar_select %p1900_p6, 1, 0 }
  0x1a   : > { %p1912_p8 = pneg %p1900_p6 }
  0x1c   : > { %p1507_p9 = pnand %p1912_p8, %p1505_p7 }
  0x1e   : > { %p1508_p10 = pneg %p1507_p9 }
  0x20   : > { %p1513_p12 = pnand %p1511_p11, %p1508_p10 }
  0x22   : > { %1516 = shalt.err (!%p1513_p12)
}
  0x23   : > { %s1517_s25 = scalar_lea.vmem %s251_s11, 128  ;;  %p1525_p5 = scmp.lt.s32.totalorder %s251_s11, %s251_s11 }
  0x24   : > { %p1518_p13 = scmp.ne.s32.totalorder %s251_s11, %s1517_s25  ;;  %p1526_p4 = scmp.lt.s32.totalorder %s1517_s25, %s1517_s25 }
  0x26   : > { %p1520_p0 = pnand %p1518_p13, %p1912_p8  ;;  %p1527_p1 = por %p1526_p4, %p1525_p5 }
  0x28   : > { %p1521_p2 = pneg %p1520_p0 }
  0x2a   : > { %p1528_p3 = pnand %p1527_p1, %p1521_p2 }
  0x2c   : > { %1531 = shalt.err (!%p1528_p3)
}
  0x2d   : > { %1387 = dma.hbm_to_vmem [thread:$0]  (!%p1900_p6), %s2319_s1, 128, %s251_s11, [#allocation8]  }
  0x2e   : > { %s2321_s3 = sld [smem:[#allocation29_spill]] }
  0x34   : > { %s1532_s14 = scalar_lea.hbm %s2321_s3, 128 }
  0x35   : > { %p1533_p7 = scmp.ne.s32.totalorder %s2321_s3, %s1532_s14  ;;  %p1539_p1 = scmp.lt.u32.totalorder %s1532_s14, %s2321_s3 }
  0x37   : > { %p1535_p9 = pnand %p1533_p7, %p1912_p8 }
  0x39   : > { %p1536_p4 = pneg %p1535_p9 }
  0x3b   : > { %p1541_p3 = pnand %p1539_p1, %p1536_p4 }
  0x3d   : > { %1544 = shalt.err (!%p1541_p3)
}
  0x3e   : > { %s1545_s11 = scalar_lea.vmem %s1896_s15, 128  ;;  %p1553_p13 = scmp.lt.s32.totalorder %s1896_s15, %s1896_s15 }
  0x3f   : > { %p1546_p10 = scmp.ne.s32.totalorder %s1896_s15, %s1545_s11  ;;  %p1554_p0 = scmp.lt.s32.totalorder %s1545_s11, %s1545_s11 }
  0x41   : > { %p1548_p11 = pnand %p1546_p10, %p1912_p8  ;;  %p1555_p2 = por %p1554_p0, %p1553_p13 }
  0x43   : > { %p1549_p12 = pneg %p1548_p11 }
  0x45   : > { %p1556_p5 = pnand %p1555_p2, %p1549_p12 }
  0x47   : > { %1559 = shalt.err (!%p1556_p5)
}
  0x48   : > { %1393 = dma.hbm_to_vmem [thread:$0]  (!%p1900_p6), %s2321_s3, 128, %s1896_s15, [#allocation11]  }
  0x49   : > { %s1288_s24 = sadd.s32 4294967294, %s1786_s10   ;;  %s1953_s25 = sadd.s32 1, %s1786_s10  }
  0x4a   : > { %2322 = sst [smem:[#allocation24_spill]] %s1953_s25  ;;  %s32_s26 = ssub.s32 %s1786_s10, %s1953_s25 }
  0x4b   : > { %s35_s27 = sadd.s32 1, %s1782_s9  ;;  %p33_p7 = scmp.eq.s32.totalorder %s32_s26, 0 }
  0x4c   : > { %p42_p9 = scmp.ne.s32.totalorder %s1782_s9, %s1778_s30  ;;  %p43_p4 = scmp.eq.s32.totalorder %s1786_s10, 0 }
  0x4d   : > { %p48_p1 = scmp.ne.s32.totalorder %s1778_s30, %s1774_s29  ;;  %p2324_p10 = scmp.eq.s32.totalorder %s1884_s12, 0 }
  0x4e   : > { %s1964_s28 = scalar_select %p33_p7, %s1782_s9, %s35_s27  }
  0x4f   : > { %p44_p3 = por %p43_p4, %p42_p9  ;;  %p1968_p11 = por %p2324_p10, %p48_p1 }
  0x50   : > { %2323 = sst [smem:[#allocation25_spill]] %s1964_s28  ;;  %p224_p12 = scmp.eq.s32.totalorder %s1884_s12, 1 }
  0x51   : > { %s2325_s15 = scalar_select %p1968_p11, 1, 0 }
  0x52   : > { %p230_p13 = scmp.eq.s32.totalorder %s1288_s24, 1  ;;  %p1973_p0 = por %p224_p12, %p42_p9 }
  0x53   : > { %p1416_p5 = scmp.lt.s32.totalorder %s1786_s10, 2  ;;  %s310_s17 = sand.u32 1, %s1786_s10  }
  0x54   : > { %s2326_s6 = scalar_select %p1973_p0, 1, 0 }
  0x55   : > { %p1977_p2 = por %p230_p13, %p48_p1  ;;  %s312_s18 = sand.u32 1, %s1782_s9  }
  0x56   : > { %s1355_s19 = smul.u32 80, %s312_s18  ;;  %p1984_p7 = pnand %p1416_p5, %p44_p3 }
  0x57   : > { %s2327_s14 = scalar_select %p1977_p2, 1, 0 }
  0x58   : > { %s2329_s20 = scalar_select %p1984_p7, 1, 0 }
  0x59   : > { %2328 = sst [smem:[#allocation26_spill]] %s2327_s14  ;;  %s1356_s11 = smul.u32 1280, %s1786_s10 }
  0x5a   : > { %s1989_s21 = sshll.u32 %s312_s18, 5  ;;  %s2330_s0 = sld [smem:[#allocation27_spill]] }
  0x5b   : > { %s314_s27 = scalar_lea.vmem [#allocation4], %s1355_s19  ;;  %s1998_s3 = scalar_lea.sflag [#allocation5], %s310_s17 }
  0x5c   : > { %s321_s1 = sshll.u32 %s314_s27, 4  ;;  %p2308_p4 = pneg %p1984_p7  ;;  %s1996_s1 = int_to_ptr.vmem [resolvable:$true] %s321_s1 }
  0x60   : > { %s1994_s26 = scalar_lea.hbm %s2330_s0, %s1356_s11  ;;  %s1565_s23 = scalar_lea.hbm %s2330_s0, 2560 }
  0x61   : > { %s1560_s28 = scalar_lea.hbm %s1994_s26, 1280  ;;  %p1566_p10 = scmp.lt.u32.totalorder %s1994_s26, %s2330_s0 }
  0x62   : > { %p1561_p9 = scmp.ne.s32.totalorder %s1994_s26, %s1560_s28  ;;  %p1567_p12 = scmp.lt.u32.totalorder %s1565_s23, %s1560_s28 }
  0x63   : > { %p1569_p5 = scmp.lt.u32.totalorder %s1560_s28, %s1994_s26 }
  0x64   : > { %p1563_p1 = pnand %p2308_p4, %p1561_p9  ;;  %p1568_p13 = por %p1567_p12, %p1566_p10 }
  0x66   : > { %p1564_p3 = pneg %p1563_p1  ;;  %p1570_p2 = por %p1569_p5, %p1568_p13 }
  0x68   : > { %p1571_p0 = pnand %p1570_p2, %p1564_p3 }
  0x6a   : > { %1574 = shalt.err (!%p1571_p0)
}
  0x6b   : > { %s1575_s17 = scalar_lea.vmem %s1996_s1, 1280  ;;  %s1790_s19 = smov [#allocation4]  }
  0x6c   : > { %p1576_p9 = scmp.ne.s32.totalorder %s1996_s1, %s1575_s17  ;;  %s1580_s27 = sshll.u32 %s1790_s19, 4  ;;  %s1581_s27 = int_to_ptr.vmem [resolvable:$false] %s1580_s27 }
  0x6d   : > { %s1582_s9 = scalar_lea.vmem %s1581_s27, 2560  ;;  %p1583_p6 = scmp.lt.s32.totalorder %s1996_s1, %s1581_s27 }
  0x6e   : > { %p1578_p1 = pnand %p1576_p9, %p2308_p4  ;;  %p1584_p10 = scmp.lt.s32.totalorder %s1582_s9, %s1575_s17 }
  0x70   : > { %p1579_p11 = pneg %p1578_p1  ;;  %p1585_p12 = por %p1584_p10, %p1583_p6 }
  0x72   : > { %p1586_p13 = pnand %p1585_p12, %p1579_p11 }
  0x74   : > { %1589 = shalt.err (!%p1586_p13)
}
  0x75   : > { %s2309_s28 = smov 256   ;;  %s2310_s18 = smov 16  }
  0x76   : > { %1403 = dma.hbm_to_vmem [thread:$0]  (!%p1984_p7), %s1994_s26, 1280, %s1996_s1, %s1998_s3, %s2309_s28, %s2309_s28, %s2310_s18  }
  0x77   : > { %s1793_s11 = smov [#allocation9]   ;;  %s1794_s24 = smov [#allocation12]  }
  0x78   : > { %s261_s23 = sshll.u32 %s1793_s11, 4  ;;  %s283_s19 = sshll.u32 %s1794_s24, 4  ;;  %s262_s23 = int_to_ptr.vmem [resolvable:$true] %s261_s23  ;;  %s2029_s19 = int_to_ptr.vmem [resolvable:$true] %s283_s19 }
  0x79   : > { %s1590_s9 = scalar_lea.hbm %s2291_s2, 32 }
  0x7a   : > { %p1591_p6 = scmp.ne.s32.totalorder %s2291_s2, %s1590_s9  ;;  %p1597_p2 = scmp.lt.u32.totalorder %s1590_s9, %s2291_s2 }
  0x7c   : > { %p1593_p11 = pnand %p1591_p6, %p1912_p8 }
  0x7e   : > { %p1594_p0 = pneg %p1593_p11 }
  0x80   : > { %p1599_p3 = pnand %p1597_p2, %p1594_p0 }
  0x82   : > { %1602 = shalt.err (!%p1599_p3)
}
  0x83   : > { %s1603_s26 = scalar_lea.vmem %s262_s23, 32  ;;  %p1611_p10 = scmp.lt.s32.totalorder %s262_s23, %s262_s23 }
  0x84   : > { %p1604_p5 = scmp.ne.s32.totalorder %s262_s23, %s1603_s26  ;;  %p1612_p12 = scmp.lt.s32.totalorder %s1603_s26, %s1603_s26 }
  0x86   : > { %p1606_p9 = pnand %p1604_p5, %p1912_p8  ;;  %p1613_p13 = por %p1612_p12, %p1611_p10 }
  0x88   : > { %p1607_p1 = pneg %p1606_p9 }
  0x8a   : > { %p1614_p4 = pnand %p1613_p13, %p1607_p1 }
  0x8c   : > { %1617 = shalt.err (!%p1614_p4)
}
  0x8d   : > { %p2331_p6 = scmp.ne.s32.totalorder %s2318_s16, 0  ;;  %s1618_s24 = scalar_lea.hbm %s2293_s4, 64 }
  0x8e   : > { %p1619_p11 = scmp.ne.s32.totalorder %s2293_s4, %s1618_s24  ;;  %p1625_p4 = scmp.lt.u32.totalorder %s1618_s24, %s2293_s4 }
  0x8f   : > { %1390 = dma.hbm_to_vmem [thread:$0]  (!%p2331_p6), %s2291_s2, 32, %s262_s23, [#allocation8]  }
  0x90   : > { %p1621_p0 = pnand %p1619_p11, %p1912_p8 }
  0x92   : > { %p1622_p2 = pneg %p1621_p0 }
  0x94   : > { %p1627_p3 = pnand %p1625_p4, %p1622_p2 }
  0x96   : > { %1630 = shalt.err (!%p1627_p3)
}
  0x97   : > { %s1631_s23 = scalar_lea.vmem %s2029_s19, 64  ;;  %p1639_p10 = scmp.lt.s32.totalorder %s2029_s19, %s2029_s19 }
  0x98   : > { %p1632_p5 = scmp.ne.s32.totalorder %s2029_s19, %s1631_s23  ;;  %p1640_p12 = scmp.lt.s32.totalorder %s1631_s23, %s1631_s23 }
  0x9a   : > { %p1634_p9 = pnand %p1632_p5, %p1912_p8  ;;  %p1641_p13 = por %p1640_p12, %p1639_p10 }
  0x9c   : > { %p1635_p1 = pneg %p1634_p9 }
  0x9e   : > { %p1642_p11 = pnand %p1641_p13, %p1635_p1 }
  0xa0   : > { %1645 = shalt.err (!%p1642_p11)
}
  0xa1   : > { %1396 = dma.hbm_to_vmem [thread:$0]  (!%p2331_p6), %s2293_s4, 64, %s2029_s19, [#allocation11]  }
  0xa2   : > { %s1331_s25 = sshll.u32 %s1786_s10, 9  ;;  %s1795_s14 = smov [#allocation13]  }
  0xa3   : > { %s293_s11 = sshll.u32 %s1795_s14, 4  ;;  %s2076_s27 = scalar_lea.hbm %s2296_s7, %s1331_s25  ;;  %s294_s11 = int_to_ptr.vmem [resolvable:$true] %s293_s11 }
  0xa4   : > { %s335_s9 = scalar_lea.vmem [#allocation15], %s1989_s21  ;;  %s1646_s18 = scalar_lea.hbm %s2294_s5, 512 }
  0xa5   : > { %s342_s1 = sshll.u32 %s335_s9, 4  ;;  %p1647_p0 = scmp.ne.s32.totalorder %s2294_s5, %s1646_s18  ;;  %s2100_s1 = int_to_ptr.vmem [resolvable:$true] %s342_s1 }
  0xa6   : > { %p1653_p3 = scmp.lt.u32.totalorder %s1646_s18, %s2294_s5 }
  0xa7   : > { %p1649_p2 = pnand %p1647_p0, %p1912_p8 }
  0xa9   : > { %p1650_p4 = pneg %p1649_p2 }
  0xab   : > { %p1655_p5 = pnand %p1653_p3, %p1650_p4 }
  0xad   : > { %1658 = shalt.err (!%p1655_p5)
}
  0xae   : > { %s1659_s25 = scalar_lea.vmem %s294_s11, 512  ;;  %p1667_p12 = scmp.lt.s32.totalorder %s294_s11, %s294_s11 }
  0xaf   : > { %p1660_p9 = scmp.ne.s32.totalorder %s294_s11, %s1659_s25  ;;  %p1668_p13 = scmp.lt.s32.totalorder %s1659_s25, %s1659_s25 }
  0xb1   : > { %p1662_p1 = pnand %p1660_p9, %p1912_p8  ;;  %p1669_p11 = por %p1668_p13, %p1667_p12 }
  0xb3   : > { %p1663_p10 = pneg %p1662_p1 }
  0xb5   : > { %p1670_p7 = pnand %p1669_p11, %p1663_p10 }
  0xb7   : > { %1673 = shalt.err (!%p1670_p7)
}
  0xb8   : > { %s2332_s21 = smov 16   ;;  %s2333_s28 = smov 256  }
  0xb9   : > { %1399 = dma.hbm_to_vmem [thread:$0]  (!%p2331_p6), %s2294_s5, 512, %s294_s11, [#allocation14], %s2333_s28, %s2333_s28, %s2332_s21  }
  0xba   : > { %s1674_s22 = scalar_lea.hbm %s2076_s27, 512  ;;  %p2334_p0 = scmp.ne.s32.totalorder %s2329_s20, 0 }
  0xbb   : > { %p1675_p8 = scmp.ne.s32.totalorder %s2076_s27, %s1674_s22  ;;  %s1679_s9 = scalar_lea.hbm %s2296_s7, 1024 }
  0xbc   : > { %p2335_p7 = pneg %p2334_p0  ;;  %p1680_p3 = scmp.lt.u32.totalorder %s2076_s27, %s2296_s7 }
  0xbd   : > { %p1681_p5 = scmp.lt.u32.totalorder %s1679_s9, %s1674_s22  ;;  %p1683_p1 = scmp.lt.u32.totalorder %s1674_s22, %s2076_s27 }
  0xbe   : > { %p1677_p2 = pnand %p1675_p8, %p2335_p7 }
  0xbf   : > { %p1682_p9 = por %p1681_p5, %p1680_p3 }
  0xc0   : > { %p1678_p4 = pneg %p1677_p2 }
  0xc1   : > { %p1684_p6 = por %p1683_p1, %p1682_p9 }
  0xc3   : > { %p1685_p10 = pnand %p1684_p6, %p1678_p4 }
  0xc5   : > { %1688 = shalt.err (!%p1685_p10)
}
  0xc6   : > { %s1689_s11 = scalar_lea.vmem %s2100_s1, 512  ;;  %p2336_p13 = pmov %p2335_p7 }
  0xc7   : > { %p1690_p12 = scmp.ne.s32.totalorder %s2100_s1, %s1689_s11  ;;  %s1796_s0 = smov [#allocation15]  }
  0xc8   : > { %s1694_s19 = sshll.u32 %s1796_s0, 4  ;;  %s1695_s19 = int_to_ptr.vmem [resolvable:$false] %s1694_s19 }
  0xc9   : > { %p1692_p11 = pnand %p1690_p12, %p2336_p13  ;;  %s1696_s14 = scalar_lea.vmem %s1695_s19, 1024 }
  0xca   : > { %p1697_p7 = scmp.lt.s32.totalorder %s2100_s1, %s1695_s19  ;;  %p1698_p2 = scmp.lt.s32.totalorder %s1696_s14, %s1689_s11 }
  0xcb   : > { %p1693_p8 = pneg %p1692_p11 }
  0xcc   : > { %p1699_p3 = por %p1698_p2, %p1697_p7 }
  0xce   : > { %p1700_p5 = pnand %p1699_p3, %p1693_p8 }
  0xd0   : > { %1703 = shalt.err (!%p1700_p5)
}
  0xd1   : > { %s1797_s25 = smov 128   ;;  %s1798_s21 = smov 8  }
  0xd2   : > { %1406 = dma.hbm_to_vmem [thread:$0]  (!%p2334_p0), %s2076_s27, 512, %s2100_s1, %s1998_s3, %s1797_s25, %s1797_s25, %s1798_s21  }
  0xd3   : > { %p2337_p4 = scmp.ne.s32.totalorder %s2317_s13, 0 }
  0xd4   : > { %s356_s28 = sand.u32 (!%p2337_p4), 1, %s1884_s12   ;;  %s2130_s24 = sand.u32 (!%p2337_p4), 1, %s1778_s30  }
  0xd5   : > { %354 = sbr.rel (%p2337_p4) target bundleno = 1819 (0x71b), region = 52  ;;  %s357_s22 = scalar_lea.sflag (!%p2337_p4), [#allocation5], %s356_s28 }
  0xd6   : > { %s1357_s18 = smul.u32 (!%p2337_p4), 80, %s2130_s24  ;;  %p2338_p9 = scmp.ne.s32.totalorder (!%p2337_p4), %s2325_s15, 0 }
  0xd8   : > { %s2133_s16 = scalar_lea.vmem (!%p2337_p4), [#allocation4], %s1357_s18 }
  0xdc   : > { %1749 = dma.done.wait (%p2338_p9), %s357_s22, 1280  }
  0xdd   : > { %1751 = vsyncadd (%p2338_p9), %s357_s22, 4294966016  ;;  %p2339_p0 = scmp.eq.s32.totalorder %s1884_s12, 0 }
  0xdf   : > { %1753 = dma.done.wait (%p2339_p0), [#allocation8], 160   ;;  %p2340_p1 = pmov %p2339_p0 }
  0xe0   : > { %p2341_p6 = pmov %p2339_p0 }
  0xe1   : > { %1755 = vsyncadd (%p2340_p1), [#allocation8], 4294967136 }
  0xe2   : > { %1757 = dma.done.wait (%p2341_p6), [#allocation11], 192   ;;  %p2342_p10 = pmov %p2339_p0 }
  0xe3   : > { %p2343_p12 = pmov %p2339_p0 }
  0xe4   : > { %1759 = vsyncadd (%p2342_p10), [#allocation11], 4294967104 }
  0xe5   : > { %1761 = dma.done.wait (%p2343_p12), [#allocation14], 512   ;;  %p2344_p13 = pmov %p2339_p0 }
  0xe6   : > { %s1306_s3 = sshll.u32 %s2130_s24, 5 }
  0xe7   : > { %1763 = vsyncadd (%p2344_p13), [#allocation14], 4294966784  ;;  %s2154_s13 = scalar_lea.vmem [#allocation15], %s1306_s3 }
  0xe8   : > { %1765 = dma.done.wait (%p2338_p9), %s357_s22, 512  }
  0xe9   : > { %1767 = vsyncadd (%p2338_p9), %s357_s22, 4294966784  ;;  %v1799_v0 = vmov 0.0   ;;  %v442_v1 = vld [vmem:[%s2133_s16 + $0x8] sm:$0xff]  ;;  %v444_v2 = vld [vmem:[%s2133_s16 + $0x18] sm:$0xff]  ;;  %vm455_vm0 = vcmask 1043456   ;;  %vm451_vm1 = vcmask 293888   ;;  %v427_v33 = vlaneseq }
  0xea   : > { %526 = vmatprep.mubr.f32.mxu0 %v1799_v0  ;;  %1337 = vmatprep.subr.mxu1 %v1799_v0  ;;  %v441_v3 = vld [vmem:[%s2133_s16] sm:$0xff]  ;;  %v1347_v4 = vpack.c.bf16 %v444_v2, %v442_v1  ;;  %v443_v5 = vld [vmem:[%s2133_s16 + $0x10] sm:$0xff]  ;;  %v446_v6 = vld [vmem:[%s2133_s16 + $0x28] sm:$0xff]  ;;  %vm1800_vm2 = vmmov 0   ;;  %vm538_vm3 = vcmask 64512   ;;  %vm617_vm4 = vcmask 1041408  }
  0xeb   : > { %v448_v7 = vld [vmem:[%s2133_s16 + $0x38] sm:$0xff]  ;;  %v1349_v8 = vpack.c.bf16 %v443_v5, %v441_v3  ;;  %v445_v10 = vld [vmem:[%s2133_s16 + $0x20] sm:$0xff]  ;;  %v447_v11 = vld [vmem:[%s2133_s16 + $0x30] sm:$0xff]  ;;  %1339 = vmatprep.mubr.msk.f32.mxu1 %vm1800_vm2, %v1799_v0  ;;  %vm613_vm5 = vcmask 15360   ;;  %v1801_v26 = vmov 0   ;;  %vm429_vm6 = vcmp.lt.s32.totalorder %v427_v33, 290 }
  0xec   : > { %v1351_v9 = vpack.c.bf16 %v448_v7, %v446_v6  ;;  %1348 = vmatprep.subr.bf16.mxu0 %v1347_v4  ;;  %v1353_v12 = vpack.c.bf16 %v447_v11, %v445_v10  ;;  %v450_v13 = vld [vmem:[%s2133_s16 + $0x48] sm:$0xf]  ;;  %v449_v14 = vld [vmem:[%s2133_s16 + $0x40] sm:$0xf]  ;;  %1479 = vset.pattern.permute.xlu0 %v1801_v26  ;;  %431 = vst.msk [vmem:[#allocation2] sm:$0x7] %vm429_vm6, %v1799_v0 }
  0xed   : > { %1350 = vmatpush1.bf16.msra.mxu0 %v1349_v8  ;;  %v432_v15 = vld [vmem:[#allocation7] sm:$0xff]  ;;  %v433_v21 = vld [vmem:[#allocation9] sm:$0x3]  ;;  %v434_v25 = vld [vmem:[#allocation10] sm:$0xff]  ;;  %v1802_v43 = vmov 1966171168  }
  0xee   : > { %1352 = vmatprep.subr.bf16.mxu0 %v1351_v9  ;;  %v723_v44 = vunpack.c.l.s4 %v1802_v43  ;;  %v2186_v50 = vshrl.u32 %v427_v33, 7  ;;  %s1803_s15 = smov 17   ;;  %vm742_vm7 = vcmp.ge.s32.totalorder %v427_v33, 17  ;;  %vm743_vm8 = vcmp.lt.s32.totalorder %v427_v33, 273  ;;  %s1804_s20 = smov 127  }
  0xef   : > { %vm739_vm9 = vcmask 138240   ;;  %vm744_vm10 = vmand %vm742_vm7, %vm743_vm8  ;;  %s1805_s27 = smov 111   ;;  %s1806_s1 = smov 110   ;;  %vm782_vm11 = vcmask 1039360   ;;  %vm803_vm12 = vcmask 1031168   ;;  %vm824_vm13 = vcmask 916480  }
  0xf0   : > { %v724_v49 = vunpack.c.0.s8 %v723_v44  ;;  %v2190_v62 = vsub.s32 0, %v2186_v50  ;;  %v2193_v63 = vsub.s32 1, %v2186_v50  ;;  %v2196_v1 = vsub.s32 2, %v2186_v50  ;;  %s1807_s17 = smov 96   ;;  %s1808_s9 = smov 126  }
  0xf1   : > { %1354 = vmatpush1.bf16.msra.mxu0 %v1353_v12  ;;  %s1809_s23 = smov 95   ;;  %s1810_s26 = smov 94   ;;  %vm845_vm14 = vcmask 908288   ;;  %vm866_vm15 = vcmask 900096  }
  0xf2   : > { %1308 = vmatprep.subr.msk.mxu0 %vm455_vm0, %v450_v13  ;;  %v727_v55 = vsub.s32 %v724_v49, %v2186_v50  ;;  %s1811_s11 = smov 112   ;;  %s440_s0 = sld [smem:[#allocation3]] }
  0xf3   : > { %s1332_s19 = sshll.u32 %s1884_s12, 9  ;;  %s426_s14 = scalar_lea.vmem [#allocation16], %s1306_s3 }
  0xf4   : > { %s1147_s25 = sshll.u32 %s426_s14, 4  ;;  %s2243_s18 = scalar_lea.hbm %s2297_s8, %s1332_s19  ;;  %s2245_s25 = int_to_ptr.vmem [resolvable:$true] %s1147_s25 }
  0xf5   : > { %1309 = vmatpush1.msk.msra.mxu0 %vm455_vm0, %v449_v14  ;;  %vm887_vm0 = vcmask 785408   ;;  %s1134_s12 = scalar_lea.sflag [#allocation6], %s2130_s24  ;;  %s1704_s22 = scalar_lea.vmem %s2245_s25, 512 }
  0xf6   : > { %1310 = vmatmul.mubr.msk.f32.vlgmr.msra.gmra.mrb[0].mxu0 %vm451_vm1, %v432_v15  ;;  %vm908_vm1 = vcmask 777216   ;;  %p1705_p11 = scmp.ne.s32.totalorder %s2245_s25, %s1704_s22  ;;  %p2345_p8 = scmp.ne.s32.totalorder %s2326_s6, 0 }
  0xf7   : > { %s1812_s16 = smov [#allocation16]  }
  0xf8   : > { %p1706_p7 = pnand %p1705_p11, %p2345_p8  ;;  %s1708_s3 = sshll.u32 %s1812_s16, 4  ;;  %s1709_s3 = int_to_ptr.vmem [resolvable:$false] %s1708_s3 }
  0xf9   : > { %p1711_p3 = scmp.lt.s32.totalorder %s2245_s25, %s1709_s3 }
  0xfa   : > { %p1707_p2 = pneg %p1706_p7 }
 0x1c9   : > { %v528_v16 = vpop.f32.mrb[0].mxu0 }
 0x1ca   : > { %v530_v17 = vpop.f32.mrb[1].mxu0 }
 0x1cb   : > { %v533_v18 = vadd.f32 %v530_v17, %v528_v16 }
 0x1cd   : > { %534 = vadd.xlane.f32.xlu0 %v533_v18 }
 0x25a   : > { %v535_v19 = vpop.xlane.xlu0 %534 }
 0x25b   : > { %v537_v20 = vmul.f32 0.00390625, %v535_v19 }
 0x25d   : > { %1338 = vmatpush3.msra.mxu1 %v537_v20 }
 0x25e   : > { %1340 = vmatmul.mubr.msk.f32.vlgmr.msra.gmra.mrb[0].mxu1 %vm538_vm3, %v433_v21  ;;  %1342 = vmatprep.subr.mxu1 %v1799_v0 }
 0x25f   : > { %1344 = vmatprep.mubr.msk.f32.mxu1 %vm1800_vm2, %v1799_v0  ;;  %vm929_vm2 = vcmask 769024  }
 0x331   : > { %v608_v22 = vpop.f32.mrb[0].mxu1 }
 0x332   : > { %v612_v23 = vmax.f32 %v608_v22, 0.0  ;;  %v1341_v24 = vpop.f32.mrb[1].mxu1 }
 0x334   : > { %1343 = vmatpush3.msk.msra.mxu1 %vm617_vm4, %v612_v23  ;;  %v2201_v23 = vld [vmem:[#allocation13] sm:$0xff] }
 0x335   : > { %1345 = vmatmul.mubr.msk.f32.vlgmr.msra.gmra.mrb[2].mxu1 %vm613_vm5, %v434_v25  ;;  %v437_v25 = vld [vmem:[#allocation13 + $0x8] sm:$0xff] }
 0x336   : > { %1032 = vmatprep.mubr.f32.mxu1 %v1799_v0 }
 0x408   : > { %v687_v27 = vpop.f32.mrb[2].mxu1 }
 0x409   : > { %v1314_v28 = vmul.f32 -1.442695, %v687_v27  ;;  %v1346_v29 = vpop.f32.mrb[3].mxu1 }
 0x40b   : > { %1484 = vpow2.f32 %v1314_v28 }
 0x415   : > { %v1485_v30 = vpop.eup %1484 }
 0x416   : > { %v694_v31 = vadd.f32 1.0, %v1485_v30 }
 0x418   : > { %1486 = vrcp.f32 %v694_v31 }
 0x422   : > { %v1487_v32 = vpop.eup %1486 }
 0x423   : > { %699 = vperm.xlu0 %1479, %v1487_v32  }
 0x4a2   : > { %v700_v34 = vpop.permute.xlu0 %699 }
 0x4a3   : > { %v2178_v35 = vadd.f32 %v700_v34, %v528_v16  ;;  %v2180_v36 = vadd.f32 %v700_v34, %v530_v17 }
 0x4a5   : > { %v704_v37 = vrot.slane %v2178_v35, 4  ;;  %v710_v38 = vrot.slane %v2180_v36, 4 }
 0x4a7   : > { %v705_v39 = vadd.f32 %v704_v37, %v2178_v35  ;;  %v711_v40 = vadd.f32 %v710_v38, %v2180_v36 }
 0x4a9   : > { %v706_v41 = vrot.slane %v705_v39, 2  ;;  %v712_v42 = vrot.slane %v711_v40, 2 }
 0x4ab   : > { %v707_v45 = vadd.f32 %v706_v41, %v705_v39  ;;  %v713_v46 = vadd.f32 %v712_v42, %v711_v40 }
 0x4ad   : > { %v708_v47 = vrot.slane %v707_v45, 1  ;;  %v714_v48 = vrot.slane %v713_v46, 1 }
 0x4af   : > { %v709_v51 = vadd.f32 %v708_v47, %v707_v45  ;;  %v715_v52 = vadd.f32 %v714_v48, %v713_v46 }
 0x4b1   : > { %v717_v53 = vmul.f32 0.125, %v709_v51  ;;  %v718_v54 = vmul.f32 0.125, %v715_v52 }
 0x4b3   : > { %v721_v56 = vcombine.low %v717_v53, %v718_v54 }
 0x4b5   : > { %v728_v57 = vrot.slane %v721_v56, %v727_v55 }
 0x4b7   : > { %v735_v58 = vrot.slane %v728_v57, %v727_v55 }
 0x4b9   : > { %736 = vrot.lane.b32.xlu1 %v735_v58, %s1803_s15 }
 0x52b   : > { %v737_v59 = vpop.permute.xlu1 %736 }
 0x52c   : > { %v738_v60 = vrot.slane %v737_v59, 7 }
 0x52e   : > { %v740_v61 = vsel %vm739_vm9, %v738_v60, %v737_v59 }
 0x52f   : > { %745 = vst.msk [vmem:[#allocation2] sm:$0x7] %vm744_vm10, %v740_v61 }
 0x536   : > { %v762_v0 = vld [vmem:[#allocation2] sm:$0x7] }
 0x537   : > { %v771_v2 = vrot.slane %v762_v0, %v2193_v63  ;;  %v767_v3 = vrot.slane %v762_v0, %v2190_v62  ;;  %v775_v4 = vrot.slane %v762_v0, %v2196_v1  ;;  %v746_v22 = vld [vmem:[#allocation2] sm:$0x3] }
 0x538   : > { %v751_v31 = vrot.slane %v746_v22, %v2190_v62  ;;  %v755_v33 = vrot.slane %v746_v22, %v2193_v63 }
 0x539   : > { %778 = vrot.lane.b32.xlu1 %v771_v2, %s1804_s20  ;;  %839 = vrot.lane.b32.xlu0 %v767_v3, %s1805_s27 }
 0x53a   : > { %v758_v46 = vmul.f32 %v751_v31, %v2201_v23  ;;  %v759_v51 = vmul.f32 %v755_v33, %v437_v25 }
 0x53d   : > { %780 = vrot.lane.b32.xlu1 %v775_v4, %s1804_s20  ;;  %864 = vrot.lane.b32.xlu0 %v775_v4, %s1806_s1 }
 0x541   : > { %883 = vrot.lane.b32.xlu0 %v771_v2, %s1807_s17  ;;  %776 = vrot.lane.b32.xlu1 %v767_v3, %s1804_s20 }
 0x545   : > { %881 = vrot.lane.b32.xlu0 %v767_v3, %s1807_s17  ;;  %799 = vrot.lane.b32.xlu1 %v771_v2, %s1808_s9 }
 0x549   : > { %906 = vrot.lane.b32.xlu0 %v775_v4, %s1809_s23  ;;  %801 = vrot.lane.b32.xlu1 %v775_v4, %s1808_s9 }
 0x54d   : > { %925 = vrot.lane.b32.xlu0 %v771_v2, %s1810_s26  ;;  %797 = vrot.lane.b32.xlu1 %v767_v3, %s1808_s9 }
 0x551   : > { %923 = vrot.lane.b32.xlu0 %v767_v3, %s1810_s26  ;;  %820 = vrot.lane.b32.xlu1 %v771_v2, %s1811_s11 }
 0x555   : > { %822 = vrot.lane.b32.xlu1 %v775_v4, %s1811_s11 }
 0x559   : > { %818 = vrot.lane.b32.xlu1 %v767_v3, %s1811_s11 }
 0x55d   : > { %841 = vrot.lane.b32.xlu1 %v771_v2, %s1805_s27 }
 0x561   : > { %843 = vrot.lane.b32.xlu1 %v775_v4, %s1805_s27 }
 0x565   : > { %862 = vrot.lane.b32.xlu1 %v771_v2, %s1806_s1 }
 0x569   : > { %860 = vrot.lane.b32.xlu1 %v767_v3, %s1806_s1 }
 0x56d   : > { %885 = vrot.lane.b32.xlu1 %v775_v4, %s1807_s17 }
 0x571   : > { %904 = vrot.lane.b32.xlu1 %v771_v2, %s1809_s23 }
 0x575   : > { %902 = vrot.lane.b32.xlu1 %v767_v3, %s1809_s23 }
 0x579   : > { %927 = vrot.lane.b32.xlu1 %v775_v4, %s1810_s26 }
 0x5ab   : > { %v779_v5 = vpop.permute.xlu1 %778  ;;  %v840_v11 = vpop.permute.xlu0 %839 }
 0x5af   : > { %v781_v6 = vpop.permute.xlu1 %780  ;;  %v865_v14 = vpop.permute.xlu0 %864 }
 0x5b0   : > { %v784_v20 = vsel %vm782_vm11, %v779_v5, %v781_v6 }
 0x5b1   : > { %v788_v29 = vmul.f32 %v784_v20, %v437_v25 }
 0x5b3   : > { %v777_v7 = vpop.permute.xlu1 %776  ;;  %v884_v16 = vpop.permute.xlu0 %883  ;;  %v792_v43 = vrot.slane %v788_v29, 1 }
 0x5b4   : > { %v783_v19 = vsel %vm782_vm11, %v777_v7, %v779_v5 }
 0x5b5   : > { %v787_v26 = vmul.f32 %v783_v19, %v2201_v23  ;;  %v796_v59 = vadd.f32 %v792_v43, %v759_v51 }
 0x5b7   : > { %v800_v8 = vpop.permute.xlu1 %799  ;;  %v882_v21 = vpop.permute.xlu0 %881  ;;  %v791_v39 = vrot.slane %v787_v26, 1 }
 0x5b8   : > { %v888_v60 = vsel %vm887_vm0, %v882_v21, %v884_v16 }
 0x5b9   : > { %v795_v54 = vadd.f32 %v791_v39, %v758_v46 }
 0x5bb   : > { %v802_v9 = vpop.permute.xlu1 %801  ;;  %v907_v40 = vpop.permute.xlu0 %906 }
 0x5bc   : > { %v805_v27 = vsel %vm803_vm12, %v800_v8, %v802_v9 }
 0x5bd   : > { %v809_v34 = vmul.f32 %v805_v27, %v437_v25 }
 0x5bf   : > { %v798_v10 = vpop.permute.xlu1 %797  ;;  %v813_v52 = vrot.slane %v809_v34, 2  ;;  %v926_v0 = vpop.permute.xlu0 %925 }
 0x5c0   : > { %v804_v24 = vsel %vm803_vm12, %v798_v10, %v800_v8 }
 0x5c1   : > { %v808_v32 = vmul.f32 %v804_v24, %v2201_v23  ;;  %v817_v6 = vadd.f32 %v813_v52, %v796_v59 }
 0x5c3   : > { %v821_v12 = vpop.permute.xlu1 %820  ;;  %v812_v47 = vrot.slane %v808_v32, 2  ;;  %v439_v32 = vld [vmem:[#allocation13 + $0x18] sm:$0x1] }
 0x5c5   : > { %v816_v2 = vadd.f32 %v812_v47, %v795_v54 }
 0x5c7   : > { %v823_v13 = vpop.permute.xlu1 %822 }
 0x5c8   : > { %v826_v37 = vsel %vm824_vm13, %v821_v12, %v823_v13 }
 0x5c9   : > { %v830_v48 = vmul.f32 %v826_v37, %v437_v25 }
 0x5cb   : > { %v819_v15 = vpop.permute.xlu1 %818  ;;  %v834_v3 = vrot.slane %v830_v48, 3 }
 0x5cc   : > { %v825_v30 = vsel %vm824_vm13, %v819_v15, %v821_v12  ;;  %v892_v12 = vmul.f32 %v888_v60, %v2201_v23 }
 0x5cd   : > { %v829_v41 = vmul.f32 %v825_v30, %v2201_v23  ;;  %v438_v30 = vld [vmem:[#allocation13 + $0x10] sm:$0x1] }
 0x5ce   : > { %v896_v26 = vrot.slane %v892_v12, 6  ;;  %v1324_v12 = vld [vmem:[%s2154_s13 + $0x18] sm:$0xff] }
 0x5cf   : > { %v842_v17 = vpop.permute.xlu1 %841  ;;  %v833_v55 = vrot.slane %v829_v41, 3 }
 0x5d0   : > { %v846_v38 = vsel %vm845_vm14, %v840_v11, %v842_v17 }
 0x5d1   : > { %v850_v49 = vmul.f32 %v846_v38, %v2201_v23  ;;  %v837_v7 = vadd.f32 %v833_v55, %v816_v2 }
 0x5d3   : > { %v844_v18 = vpop.permute.xlu1 %843  ;;  %v854_v4 = vrot.slane %v850_v49, 4 }
 0x5d4   : > { %v847_v44 = vsel %vm845_vm14, %v842_v17, %v844_v18  ;;  %v924_v18 = vpop.permute.xlu0 %923 }
 0x5d5   : > { %v851_v56 = vmul.f32 %v847_v44, %v437_v25  ;;  %v858_v15 = vadd.f32 %v854_v4, %v837_v7  ;;  %v930_v31 = vsel %vm929_vm2, %v924_v18, %v926_v0 }
 0x5d6   : > { %v934_v39 = vmul.f32 %v930_v31, %v438_v30 }
 0x5d7   : > { %v863_v28 = vpop.permute.xlu1 %862  ;;  %v855_v8 = vrot.slane %v851_v56, 4 }
 0x5d8   : > { %v868_v53 = vsel %vm866_vm15, %v863_v28, %v865_v14  ;;  %v838_v14 = vadd.f32 %v834_v3, %v817_v6 }
 0x5d9   : > { %v872_v5 = vmul.f32 %v868_v53, %v437_v25 }
 0x5da   : > { %v859_v19 = vadd.f32 %v855_v8, %v838_v14 }
 0x5db   : > { %v861_v42 = vpop.permute.xlu1 %860  ;;  %v876_v17 = vrot.slane %v872_v5, 5 }
 0x5dc   : > { %v867_v45 = vsel %vm866_vm15, %v861_v42, %v863_v28 }
 0x5dd   : > { %v871_v57 = vmul.f32 %v867_v45, %v2201_v23  ;;  %v880_v27 = vadd.f32 %v876_v17, %v859_v19  ;;  %v940_v45 = vstv %s440_s0 }
 0x5df   : > { %v886_v58 = vpop.permute.xlu1 %885  ;;  %v875_v9 = vrot.slane %v871_v57, 5 }
 0x5e0   : > { %v889_v61 = vsel %vm887_vm0, %v884_v16, %v886_v58 }
 0x5e1   : > { %v893_v10 = vmul.f32 %v889_v61, %v437_v25  ;;  %v879_v20 = vadd.f32 %v875_v9, %v858_v15  ;;  %v1116_v9 = vsub.s32 3, %v2186_v50 }
 0x5e3   : > { %v905_v11 = vpop.permute.xlu1 %904  ;;  %v897_v21 = vrot.slane %v893_v10, 6  ;;  %v1320_v10 = vld [vmem:[%s2154_s13 + $0x8] sm:$0xff] }
 0x5e4   : > { %v910_v13 = vsel %vm908_vm1, %v905_v11, %v907_v40  ;;  %v1081_v15 = vcombine.high %v1320_v10, %v1320_v10 }
 0x5e5   : > { %v914_v16 = vmul.f32 %v910_v13, %v437_v25  ;;  %v901_v33 = vadd.f32 %v897_v21, %v880_v27  ;;  %v900_v25 = vadd.f32 %v896_v26, %v879_v20 }
 0x5e7   : > { %v903_v22 = vpop.permute.xlu1 %902  ;;  %v918_v28 = vrot.slane %v914_v16, 7  ;;  %v1123_v16 = vcombine.high %v1324_v12, %v1324_v12 }
 0x5e8   : > { %v909_v24 = vsel %vm908_vm1, %v903_v22, %v905_v11  ;;  %v1322_v11 = vld [vmem:[%s2154_s13 + $0x10] sm:$0xff] }
 0x5e9   : > { %v913_v29 = vmul.f32 %v909_v24, %v2201_v23  ;;  %v922_v40 = vadd.f32 %v918_v28, %v901_v33  ;;  %v1102_v17 = vcombine.high %v1322_v11, %v1322_v11 }
 0x5eb   : > { %v917_v34 = vrot.slane %v913_v29, 7  ;;  %v928_v37 = vpop.permute.xlu1 %927 }
 0x5ec   : > { %v931_v38 = vsel %vm929_vm2, %v926_v0, %v928_v37  ;;  %v435_v0 = vld [vmem:[#allocation12] sm:$0xf] }
 0x5ed   : > { %v921_v41 = vadd.f32 %v917_v34, %v900_v25  ;;  %v935_v42 = vmul.f32 %v931_v38, %v439_v32 }
 0x5ef   : > { %v936_v43 = vadd.f32 %v934_v39, %v921_v41  ;;  %v937_v44 = vadd.f32 %v935_v42, %v922_v40 }
 0x5f1   : > { %v938_v46 = vmax.f32 %v936_v43, 0.0  ;;  %v939_v47 = vmax.f32 %v937_v44, 0.0 }
 0x5f3   : > { %v941_v23 = vmul.f32 %v940_v45, %v938_v46  ;;  %v942_v48 = vmul.f32 %v940_v45, %v939_v47 }
 0x5f5   : > { %v1315_v49 = vmul.f32 -1.442695, %v941_v23  ;;  %v1316_v51 = vmul.f32 -1.442695, %v942_v48 }
 0x5f7   : > { %1488 = vpow2.f32 %v1315_v49 }
 0x5f8   : > { %1490 = vpow2.f32 %v1316_v51 }
 0x601   : > { %v1489_v52 = vpop.eup %1488 }
 0x602   : > { %v1491_v53 = vpop.eup %1490  ;;  %v949_v54 = vadd.f32 1.0, %v1489_v52 }
 0x603   : > { %v950_v55 = vadd.f32 1.0, %v1491_v53 }
 0x604   : > { %1492 = vrcp.f32 %v949_v54 }
 0x605   : > { %1494 = vrcp.f32 %v950_v55 }
 0x60e   : > { %v1493_v56 = vpop.eup %1492 }
 0x60f   : > { %v1495_v57 = vpop.eup %1494  ;;  %v958_v58 = vrot.slane %v1493_v56, %v2190_v62 }
 0x610   : > { %v962_v59 = vrot.slane %v1495_v57, %v2190_v62 }
 0x611   : > { %v963_v60 = vadd.f32 %v958_v58, %v2178_v35 }
 0x612   : > { %v964_v61 = vadd.f32 %v962_v59, %v2180_v36  ;;  %v1051_v36 = vld [vmem:[%s2154_s13] sm:$0xff]  ;;  %s1710_s13 = scalar_lea.vmem %s1709_s3, 1024 }
 0x613   : > { %v1061_v14 = vcombine.high %v1051_v36, %v1051_v36  ;;  %p1712_p5 = scmp.lt.s32.totalorder %s1710_s13, %s1704_s22 }
 0x614   : > { %968 = vmatprep.subr.mxu1 %v964_v61 }
 0x615   : > { %969 = vmatpush1.msra.mxu1 %v963_v60  ;;  %p1713_p4 = por %p1712_p5, %p1711_p3 }
 0x616   : > { %1317 = vmatmul.mubr.msk.f32.vlgmr.msra.gmra.mrb[4].mxu1 %vm538_vm3, %v435_v0 }
 0x617   : > { %p1714_p9 = pnand %p1713_p4, %p1707_p2 }
 0x6e9   : > { %v1034_v2 = vpop.f32.mrb[4].mxu1 }
 0x6ea   : > { %v1318_v3 = vmul.f32 -1.442695, %v1034_v2  ;;  %v1036_v4 = vpop.f32.mrb[5].mxu1 }
 0x6eb   : > { %v1319_v5 = vmul.f32 -1.442695, %v1036_v4 }
 0x6ec   : > { %1496 = vpow2.f32 %v1318_v3 }
 0x6ed   : > { %1498 = vpow2.f32 %v1319_v5 }
 0x6f6   : > { %v1497_v6 = vpop.eup %1496 }
 0x6f7   : > { %v1499_v7 = vpop.eup %1498  ;;  %v1045_v35 = vadd.f32 1.0, %v1497_v6 }
 0x6f8   : > { %v1046_v8 = vadd.f32 1.0, %v1499_v7 }
 0x6f9   : > { %1500 = vrcp.f32 %v1045_v35 }
 0x6fa   : > { %1502 = vrcp.f32 %v1046_v8 }
 0x703   : > { %v1501_v13 = vpop.eup %1500 }
 0x704   : > { %v1503_v18 = vpop.eup %1502  ;;  %v1055_v19 = vrot.slane %v1501_v13, %v2190_v62  ;;  %v1075_v20 = vrot.slane %v1501_v13, %v2193_v63  ;;  %v1096_v21 = vrot.slane %v1501_v13, %v2196_v1  ;;  %v1117_v22 = vrot.slane %v1501_v13, %v1116_v9 }
 0x705   : > { %v1059_v50 = vrot.slane %v1503_v18, %v2190_v62  ;;  %v1079_v24 = vrot.slane %v1503_v18, %v2193_v63  ;;  %v1100_v26 = vrot.slane %v1503_v18, %v2196_v1  ;;  %v1121_v27 = vrot.slane %v1503_v18, %v1116_v9 }
 0x706   : > { %v1063_v28 = vmul.f32 %v1055_v19, %v1051_v36  ;;  %v1083_v29 = vmul.f32 %v1320_v10, %v1075_v20  ;;  %v1104_v30 = vmul.f32 %v1322_v11, %v1096_v21  ;;  %v1125_v31 = vmul.f32 %v1324_v12, %v1117_v22 }
 0x707   : > { %v1064_v32 = vmul.f32 %v1061_v14, %v1059_v50  ;;  %v1084_v33 = vmul.f32 %v1081_v15, %v1079_v24  ;;  %v1105_v25 = vmul.f32 %v1102_v17, %v1100_v26  ;;  %v1126_v34 = vmul.f32 %v1123_v16, %v1121_v27 }
 0x709   : > { %v1067_v62 = vcombine.low %v1063_v28, %v1064_v32  ;;  %v1087_v63 = vcombine.low %v1083_v29, %v1084_v33  ;;  %v1108_v1 = vcombine.low %v1104_v30, %v1105_v25  ;;  %v1129_v37 = vcombine.low %v1125_v31, %v1126_v34 }
 0x70b   : > { %1069 = vst [vmem:[%s426_s14] sm:$0xff] %v1067_v62  ;;  %1321 = vst [vmem:[%s426_s14 + $0x8] sm:$0xff] %v1087_v63 }
 0x70c   : > { %1323 = vst [vmem:[%s426_s14 + $0x10] sm:$0xff] %v1108_v1  ;;  %1325 = vst [vmem:[%s426_s14 + $0x18] sm:$0xff] %v1129_v37 }
 0x70d   : > { %1717 = shalt.err (!%p1714_p9)
}
 0x70e   : > { %s1718_s15 = scalar_lea.hbm %s2243_s18, 512  ;;  %s1722_s1 = scalar_lea.hbm %s2297_s8, 1024 }
 0x70f   : > { %p1719_p0 = scmp.ne.s32.totalorder %s2243_s18, %s1718_s15  ;;  %p1723_p10 = scmp.lt.u32.totalorder %s2243_s18, %s2297_s8 }
 0x710   : > { %p1724_p12 = scmp.lt.u32.totalorder %s1722_s1, %s1718_s15  ;;  %p1726_p11 = scmp.lt.u32.totalorder %s1718_s15, %s2243_s18 }
 0x711   : > { %p1720_p1 = pnand %p1719_p0, %p2345_p8 }
 0x712   : > { %p1725_p13 = por %p1724_p12, %p1723_p10 }
 0x713   : > { %p1721_p6 = pneg %p1720_p1 }
 0x714   : > { %p1727_p7 = por %p1726_p11, %p1725_p13 }
 0x716   : > { %p1728_p2 = pnand %p1727_p7, %p1721_p6 }
 0x718   : > { %1731 = shalt.err (!%p1728_p2)
}
 0x719   : > { %s1813_s23 = smov 128   ;;  %s1814_s26 = smov 8  }
 0x71a   : > { %1382 = dma.vmem_to_hbm [thread:$0]  (%p2345_p8), %s2245_s25, 512, %s2243_s18, %s1134_s12, %s1813_s23, %s1813_s23, %s1814_s26  }
 0x71b PF: > { %s2346_s11 = sld [smem:[#allocation26_spill]]  ;;  %s1162_s0 = sand.u32 1, %s1774_s29  }
 0x71c   : > { %p2348_p5 = scmp.ge.s32.totalorder %s1786_s10, 2  ;;  %s1163_s19 = scalar_lea.sflag [#allocation6], %s1162_s0 }
 0x721   : > { %p2347_p3 = scmp.ne.s32.totalorder %s2346_s11, 0 }
 0x723   : > { %p1408_p4 = pnand %p2348_p5, %p2347_p3 }
 0x725   : > { %1769 = dma.done.wait (!%p1408_p4), %s1163_s19, 512  }
 0x726   : > { %1771 = vsyncadd (!%p1408_p4), %s1163_s19, 4294966784  ;;  %s2349_s10 = sld [smem:[#allocation24_spill]]  ;;  %s2350_s14 = sld [smem:[#allocation23_spill]] }
 0x727   : > { %s2351_s9 = sld [smem:[#allocation25_spill]]  ;;  %s2352_s29 = smov %s1778_s30 }
 0x72c   : > { %p25_p9 = scmp.ge.s32.totalorder %s2349_s10, 4   ;;  %s2353_s30 = smov %s2350_s14 }
 0x72e   :  { %27 = sbr.rel (!%p25_p9) target bundleno = 13 (0xd), region = 134 }
 0x735   :  { %1168 = vsyncpa [#allocation5], 1 }
 0x736   :  { %1170 = vsyncpa [#allocation5 + $0x1], 1 }
 0x737   :  { %1171 = vsyncpa [#allocation8], 1 }
 0x738   :  { %1172 = vsyncpa [#allocation11], 1 }
 0x739   :  { %1173 = vsyncpa [#allocation14], 1 }
 0x73a   :  { %1174 = vsyncpa [#allocation6], 1 }
 0x73b   :  { %1176 = vsyncpa [#allocation6 + $0x1], 1 }

</bundles_post_ra>
